<compile_context>
chip_gen: v6e
topology: v6e:2x2x1
jax: 0.10.0
libtpu: 0.0.40
codegen_flags: <defaults>
</compile_context>

<pallas_src>
import functools

import jax
import jax.numpy as jnp
from jax.experimental import pallas as pl
from jax.experimental.pallas import tpu as pltpu


def _round_up(x: int, m: int) -> int:
    return (x + m - 1) // m * m


def _vmem_capacity_bytes() -> int:
    try:
        return max(int(pltpu.get_tpu_info().vmem_capacity_bytes), 32 << 20)
    except Exception:
        return 64 << 20          # conservative: v7x per-TensorCore VMEM


def _accumulate(acc_ref, x_ref, tile_idx, *, seq_len, seq_tile):
    """acc += sum over this tile's *valid* sequence rows.

    tile_idx is the logical sequence-tile index; rows at/after seq_len
    (ragged tail, or whole tiles past the end on the core-split path) are
    excluded via a static-size tail slice -- no input padding, no iota mask.
    """
    n_full = seq_len // seq_tile          # tiles fully inside the sequence
    rem = seq_len % seq_tile              # valid rows of the single tail tile

    # NOTE(v7x): if the VALU ever saturates, this cast+add reduction can be
    # moved onto the idle MXU (ones-vector dot_general); not needed on v5e/v6e.
    @pl.when(tile_idx < n_full)
    def _full_tile():
        acc_ref[...] += jnp.sum(x_ref[...], axis=1, dtype=jnp.float32)

    if rem:
        @pl.when(tile_idx == n_full)
        def _tail_tile():
            acc_ref[...] += jnp.sum(x_ref[:, :rem, :], axis=1, dtype=jnp.float32)
    # tile_idx > n_full (core-split overflow tiles) contributes nothing.


def _fused_kernel(x_ref, w_ref, b_ref, o_ref, acc_ref, *, seq_len, seq_tile, inv_s):
    # x_ref: (Bt, St, H)   w_ref: (H, H) torch (out, in)   b_ref: (1, H)
    # o_ref: (Bt, H)       acc_ref: (Bt, H) f32, persistent across the S axis
    s = pl.program_id(1)

    @pl.when(s == 0)
    def _init():
        acc_ref[...] = jnp.zeros_like(acc_ref)

    _accumulate(acc_ref, x_ref, s, seq_len=seq_len, seq_tile=seq_tile)

    @pl.when(s == pl.num_programs(1) - 1)
    def _epilogue():
        mean_tok = acc_ref[...] * inv_s                       # scale once by 1/S
        lhs = mean_tok.astype(w_ref.dtype)                    # native-dtype MXU operands
        # Contract on weight dim 1 -> no transposed weight copy is ever built.
        y = jax.lax.dot_general(lhs, w_ref[...],
                                dimension_numbers=(((1,), (1,)), ((), ())),
                                preferred_element_type=jnp.float32)
        y = y + b_ref[...].astype(jnp.float32)
        o_ref[...] = jnp.tanh(y).astype(o_ref.dtype)


def _partial_sum_kernel(x_ref, o_ref, acc_ref, *, seq_len, seq_tile, tiles_per_core):
    # Small-batch path: grid = (2 'parallel' cores, tiles_per_core). Each core
    # streams its half of the sequence and writes one f32 partial-sum block.
    c = pl.program_id(0)
    s = pl.program_id(1)

    @pl.when(s == 0)
    def _init():
        acc_ref[...] = jnp.zeros_like(acc_ref)

    _accumulate(acc_ref, x_ref, c * tiles_per_core + s,
                seq_len=seq_len, seq_tile=seq_tile)

    @pl.when(s == tiles_per_core - 1)
    def _write():
        o_ref[0] = acc_ref[...]


def mean_pooler(hidden_states, weight, bias, *, max_seq_tile=None):
    """tanh(mean(hidden_states, axis=1) @ weight.T + bias).

    hidden_states: (B, S, H); weight: (H, H) torch Linear (out, in); bias: (H,).
    """
    B, S, H = hidden_states.shape
    x_isz = hidden_states.dtype.itemsize
    out_dtype = hidden_states.dtype
    w_bytes = weight.size * weight.dtype.itemsize
    b_bytes = bias.size * bias.dtype.itemsize

    # ---- batch tile --------------------------------------------------------
    if B <= 8:
        Bt = B                                   # block dim == full dim is legal
    else:
        Bt = min(_round_up(B, 8), 128)
        if B >= 16 and pl.cdiv(B, Bt) < 2:
            Bt = _round_up(pl.cdiv(B, 2), 8)     # keep >= 2 'parallel' tiles (megacore)
    nb = pl.cdiv(B, Bt)

    # ---- sequence tile, sized from the actual chip VMEM --------------------
    vmem_cap = _vmem_capacity_bytes()
    resident = w_bytes + b_bytes + Bt * H * 4 + 2 * Bt * H * out_dtype.itemsize
    x_budget = (vmem_cap - resident - (8 << 20)) // 2     # per double-buffered x tile
    x_budget = int(min(max(x_budget, 512 << 10), 16 << 20))
    rows = max(8, (x_budget // max(1, Bt * H * x_isz)) // 8 * 8)
    St = min(_round_up(S, 8), rows) if S >= 8 else S
    if max_seq_tile is not None and S >= 8:
        St = min(St, max(8, _round_up(int(max_seq_tile), 8)))
    ns = pl.cdiv(S, St)
    inv_s = 1.0 / S

    # Scoped-VMEM limit: raised only when the plan needs it, and capped below
    # the physical per-core capacity so Mosaic internal scratch still fits.
    needed = (2 * Bt * St * H * x_isz + 2 * w_bytes + 2 * b_bytes
              + 2 * Bt * H * out_dtype.itemsize + Bt * H * 4 + (1 << 20))
    vmem_limit = None if needed <= (14 << 20) else int(min(needed, vmem_cap - (2 << 20)))

    # ---- small-batch path: split the sequence across both TensorCores ------
    if nb == 1 and ns >= 2:
        tiles_per_core = pl.cdiv(ns, 2)

        def x_map(c, s):
            # Clamp so the DMA stays in bounds; logically out-of-range tiles
            # contribute nothing inside the kernel.
            return (0, jnp.minimum(c * tiles_per_core + s, ns - 1), 0)

        kernel = functools.partial(_partial_sum_kernel, seq_len=S, seq_tile=St,
                                   tiles_per_core=tiles_per_core)
        partial = pl.pallas_call(
            kernel,
            out_shape=jax.ShapeDtypeStruct((2, B, H), jnp.float32),
            grid=(2, tiles_per_core),
            in_specs=[pl.BlockSpec((B, St, H), x_map)],
            out_specs=pl.BlockSpec((1, B, H), lambda c, s: (c, 0, 0)),
            scratch_shapes=[pltpu.VMEM((B, H), jnp.float32)],
            compiler_params=pltpu.CompilerParams(
                dimension_semantics=("parallel", "arbitrary"),
                vmem_limit_bytes=vmem_limit),
        )(hidden_states)
        mean_tok = (partial[0] + partial[1]) * inv_s
        y = jax.lax.dot_general(mean_tok.astype(weight.dtype), weight,
                                dimension_numbers=(((1,), (1,)), ((), ())),
                                preferred_element_type=jnp.float32)
        y = jnp.tanh(y + bias.astype(jnp.float32))
        return y.astype(out_dtype)

    # ---- main path: streamed sum + fused Linear/Tanh epilogue --------------
    bias2d = bias.reshape(1, H)
    kernel = functools.partial(_fused_kernel, seq_len=S, seq_tile=St, inv_s=inv_s)
    cost = pl.CostEstimate(
        flops=int(B * S * H + 2 * B * H * H + B * H),
        transcendentals=int(B * H),
        bytes_accessed=int(hidden_states.size * x_isz + w_bytes + b_bytes
                           + B * H * out_dtype.itemsize))

    def _run(single_buffer_resident):
        resident_kw = ({"pipeline_mode": pl.Buffered(1)}
                       if single_buffer_resident else {})
        return pl.pallas_call(
            kernel,
            out_shape=jax.ShapeDtypeStruct((B, H), out_dtype),
            grid=(nb, ns),
            in_specs=[
                pl.BlockSpec((Bt, St, H), lambda b, s: (b, s, 0)),         # streamed x
                pl.BlockSpec((H, H), lambda b, s: (0, 0), **resident_kw),  # weight
                pl.BlockSpec((1, H), lambda b, s: (0, 0), **resident_kw),  # bias
            ],
            out_specs=pl.BlockSpec((Bt, H), lambda b, s: (b, 0)),          # revisited over s
            scratch_shapes=[pltpu.VMEM((Bt, H), jnp.float32)],
            compiler_params=pltpu.CompilerParams(
                dimension_semantics=("parallel", "arbitrary"),
                vmem_limit_bytes=vmem_limit),
            cost_estimate=cost,
        )(hidden_states, weight, bias2d)

    try:
        return _run(True)        # single-buffered resident weight/bias
    except Exception:
        return _run(False)       # fallback if pipeline_mode/Buffered(1) unsupported


def mean_pooler_ref(hidden_states, weight, bias):
    mean_tok = jnp.mean(hidden_states.astype(jnp.float32), axis=1)
    y = jnp.tanh(jnp.dot(mean_tok, weight.astype(jnp.float32).T,
                         precision=jax.lax.Precision.HIGHEST)
                 + bias.astype(jnp.float32))
    return y.astype(hidden_states.dtype)


if __name__ == "__main__":
    root = jax.random.PRNGKey(0)

    def make(B, S, H):
        kx, kw, kb = jax.random.split(jax.random.fold_in(root, B * 131 + S * 7 + H), 3)
        x = jax.random.normal(kx, (B, S, H), dtype=jnp.float32)
        w = jax.random.normal(kw, (H, H), dtype=jnp.float32) * 0.02
        b = jax.random.normal(kb, (H,), dtype=jnp.float32) * 0.02
        return x, w, b

    # 1) Module-sized small case (single grid step, fused epilogue).
    x, w, b = make(2, 8, 32)
    out = jax.block_until_ready(mean_pooler(x, w, b))
    assert out.shape == (2, 32)
    assert jnp.allclose(out, mean_pooler_ref(x, w, b), atol=1e-5, rtol=1e-5)

    # 2) Ragged batch + ragged sequence, multi-tile fused path (nb=2, ns=5).
    x, w, b = make(17, 70, 256)
    out = jax.block_until_ready(mean_pooler(x, w, b, max_seq_tile=16))
    assert out.shape == (17, 256)
    assert jnp.allclose(out, mean_pooler_ref(x, w, b), atol=5e-4, rtol=1e-3)

    # 3) Small batch, longer sequence: dual-TensorCore sequence-split path.
    x, w, b = make(4, 40, 128)
    out = jax.block_until_ready(mean_pooler(x, w, b, max_seq_tile=8))
    assert out.shape == (4, 128)
    assert jnp.allclose(out, mean_pooler_ref(x, w, b), atol=5e-4, rtol=1e-3)

    print("KERNEL_OK")
</pallas_src>

<mosaic_0001>
module attributes {stable_mosaic.version = 11 : i64} {
  func.func @_fused_kernel(%arg0: i32, %arg1: i32, %arg2: memref<2x8x32xf32, #tpu.memory_space<vmem>>, %arg3: memref<32x32xf32, #tpu.memory_space<vmem>>, %arg4: memref<1x32xf32, #tpu.memory_space<vmem>>, %arg5: memref<2x32xf32, #tpu.memory_space<vmem>>, %arg6: memref<2x32xf32, #tpu.memory_space<vmem>>) attributes {dimension_semantics = [#tpu.dimension_semantics<parallel>, #tpu.dimension_semantics<arbitrary>], iteration_bounds = array<i64: 1, 1>, scalar_prefetch = 0 : i64, scratch_operands = 1 : i64, tpu.core_type = #tpu.core_type<tc>, window_params = [{transform_indices = @transform_0, window_bounds = array<i64: 2, 8, 32>}, {pipeline_mode = #tpu.pipeline_mode<synchronous>, transform_indices = @transform_1, window_bounds = array<i64: 32, 32>}, {pipeline_mode = #tpu.pipeline_mode<synchronous>, transform_indices = @transform_2, window_bounds = array<i64: 1, 32>}, {transform_indices = @transform_3, window_bounds = array<i64: 2, 32>}]} {
    %c0_i32 = arith.constant 0 : i32
    %0 = arith.cmpi eq, %arg1, %c0_i32 : i32
    %1 = arith.extui %0 : i1 to i32
    %c0_i32_0 = arith.constant 0 : i32
    %2 = arith.cmpi ne, %1, %c0_i32_0 : i32
    scf.if %2 {
      %cst = arith.constant 0.000000e+00 : f32
      %9 = vector.broadcast %cst : f32 to vector<2x32xf32>
      %c0 = arith.constant 0 : index
      %c0_4 = arith.constant 0 : index
      %10 = vector.load %arg6[%c0, %c0_4] : memref<2x32xf32, #tpu.memory_space<vmem>>, vector<2x32xf32>
      tpu.vector_store %arg6[%c0, %c0_4], %9 {strides = array<i32>} : memref<2x32xf32, #tpu.memory_space<vmem>>, vector<2x32xf32>,
    } else {
    }
    %c1_i32 = arith.constant 1 : i32
    %3 = arith.cmpi slt, %arg1, %c1_i32 : i32
    %4 = arith.extui %3 : i1 to i32
    %c0_i32_1 = arith.constant 0 : i32
    %5 = arith.cmpi ne, %4, %c0_i32_1 : i32
    scf.if %5 {
      %c0 = arith.constant 0 : index
      %c0_4 = arith.constant 0 : index
      %9 = vector.load %arg6[%c0, %c0_4] : memref<2x32xf32, #tpu.memory_space<vmem>>, vector<2x32xf32>
      %c0_5 = arith.constant 0 : index
      %c0_6 = arith.constant 0 : index
      %c0_7 = arith.constant 0 : index
      %10 = vector.load %arg2[%c0_5, %c0_6, %c0_7] : memref<2x8x32xf32, #tpu.memory_space<vmem>>, vector<2x8x32xf32>
      %cst = arith.constant dense<0.000000e+00> : vector<2x32xf32>
      %11 = vector.multi_reduction <add>, %10, %cst [1] : vector<2x8x32xf32> to vector<2x32xf32>
      %12 = arith.addf %9, %11 : vector<2x32xf32>
      %c0_8 = arith.constant 0 : index
      %c0_9 = arith.constant 0 : index
      %13 = vector.load %arg6[%c0_8, %c0_9] : memref<2x32xf32, #tpu.memory_space<vmem>>, vector<2x32xf32>
      tpu.vector_store %arg6[%c0_8, %c0_9], %12 {strides = array<i32>} : memref<2x32xf32, #tpu.memory_space<vmem>>, vector<2x32xf32>,
    } else {
    }
    %c0_i32_2 = arith.constant 0 : i32
    %6 = arith.cmpi eq, %arg1, %c0_i32_2 : i32
    %7 = arith.extui %6 : i1 to i32
    %c0_i32_3 = arith.constant 0 : i32
    %8 = arith.cmpi ne, %7, %c0_i32_3 : i32
    scf.if %8 {
      %c0 = arith.constant 0 : index
      %c0_4 = arith.constant 0 : index
      %9 = vector.load %arg6[%c0, %c0_4] : memref<2x32xf32, #tpu.memory_space<vmem>>, vector<2x32xf32>
      %cst = arith.constant 1.250000e-01 : f32
      %10 = vector.broadcast %cst : f32 to vector<2x32xf32>
      %11 = arith.mulf %9, %10 : vector<2x32xf32>
      %c0_5 = arith.constant 0 : index
      %c0_6 = arith.constant 0 : index
      %12 = vector.load %arg3[%c0_5, %c0_6] : memref<32x32xf32, #tpu.memory_space<vmem>>, vector<32x32xf32>
      %cst_7 = arith.constant dense<0.000000e+00> : vector<2x32xf32>
      %13 = tpu.matmul %11, %12, %cst_7 {dimension_numbers = #tpu.dot_dimension_numbers<[1], [1], [0], [0], [0, 0, 1, 0], [], []>} : vector<2x32xf32>, vector<32x32xf32>, vector<2x32xf32> -> vector<2x32xf32>
      %c0_8 = arith.constant 0 : index
      %c0_9 = arith.constant 0 : index
      %14 = vector.load %arg4[%c0_8, %c0_9] : memref<1x32xf32, #tpu.memory_space<vmem>>, vector<1x32xf32>
      %15 = vector.broadcast %14 : vector<1x32xf32> to vector<2x32xf32>
      %16 = arith.addf %13, %15 : vector<2x32xf32>
      %17 = math.tanh %16 : vector<2x32xf32>
      %c0_10 = arith.constant 0 : index
      %c0_11 = arith.constant 0 : index
      %18 = vector.load %arg5[%c0_10, %c0_11] : memref<2x32xf32, #tpu.memory_space<vmem>>, vector<2x32xf32>
      tpu.vector_store %arg5[%c0_10, %c0_11], %17 {strides = array<i32>} : memref<2x32xf32, #tpu.memory_space<vmem>>, vector<2x32xf32>,
    } else {
    }
    return
  }
  func.func @transform_0(%arg0: i32, %arg1: i32) -> (i32, i32, i32) {
    %c0_i32 = arith.constant 0 : i32
    %c0_i32_0 = arith.constant 0 : i32
    return %arg0, %arg1, %c0_i32 : i32, i32, i32
  }
  func.func @transform_1(%arg0: i32, %arg1: i32) -> (i32, i32) {
    %c0_i32 = arith.constant 0 : i32
    %c0_i32_0 = arith.constant 0 : i32
    %c0_i32_1 = arith.constant 0 : i32
    return %c0_i32, %c0_i32_0 : i32, i32
  }
  func.func @transform_2(%arg0: i32, %arg1: i32) -> (i32, i32) {
    %c0_i32 = arith.constant 0 : i32
    %c0_i32_0 = arith.constant 0 : i32
    %c0_i32_1 = arith.constant 0 : i32
    return %c0_i32, %c0_i32_0 : i32, i32
  }
  func.func @transform_3(%arg0: i32, %arg1: i32) -> (i32, i32) {
    %c0_i32 = arith.constant 0 : i32
    %c0_i32_0 = arith.constant 0 : i32
    return %arg0, %c0_i32 : i32, i32
  }
}

module attributes {stable_mosaic.version = 11 : i64} {
  func.func @_fused_kernel(%arg0: i32, %arg1: i32, %arg2: memref<2x8x32xf32, #tpu.memory_space<vmem>>, %arg3: memref<32x32xf32, #tpu.memory_space<vmem>>, %arg4: memref<1x32xf32, #tpu.memory_space<vmem>>, %arg5: memref<2x32xf32, #tpu.memory_space<vmem>>, %arg6: memref<2x32xf32, #tpu.memory_space<vmem>>) attributes {dimension_semantics = [#tpu.dimension_semantics<parallel>, #tpu.dimension_semantics<arbitrary>], iteration_bounds = array<i64: 1, 1>, scalar_prefetch = 0 : i64, scratch_operands = 1 : i64, tpu.core_type = #tpu.core_type<tc>, window_params = [{transform_indices = @transform_0, window_bounds = array<i64: 2, 8, 32>}, {pipeline_mode = #tpu.pipeline_mode<synchronous>, transform_indices = @transform_1, window_bounds = array<i64: 32, 32>}, {pipeline_mode = #tpu.pipeline_mode<synchronous>, transform_indices = @transform_2, window_bounds = array<i64: 1, 32>}, {transform_indices = @transform_3, window_bounds = array<i64: 2, 32>}]} {
    %c0_i32 = arith.constant 0 : i32
    %0 = arith.cmpi eq, %arg1, %c0_i32 : i32
    %1 = arith.extui %0 : i1 to i32
    %c0_i32_0 = arith.constant 0 : i32
    %2 = arith.cmpi ne, %1, %c0_i32_0 : i32
    scf.if %2 {
      %cst = arith.constant 0.000000e+00 : f32
      %9 = vector.broadcast %cst : f32 to vector<2x32xf32>
      %c0 = arith.constant 0 : index
      %c0_4 = arith.constant 0 : index
      %10 = vector.load %arg6[%c0, %c0_4] : memref<2x32xf32, #tpu.memory_space<vmem>>, vector<2x32xf32>
      tpu.vector_store %arg6[%c0, %c0_4], %9 {strides = array<i32>} : memref<2x32xf32, #tpu.memory_space<vmem>>, vector<2x32xf32>,
    } else {
    }
    %c1_i32 = arith.constant 1 : i32
    %3 = arith.cmpi slt, %arg1, %c1_i32 : i32
    %4 = arith.extui %3 : i1 to i32
    %c0_i32_1 = arith.constant 0 : i32
    %5 = arith.cmpi ne, %4, %c0_i32_1 : i32
    scf.if %5 {
      %c0 = arith.constant 0 : index
      %c0_4 = arith.constant 0 : index
      %9 = vector.load %arg6[%c0, %c0_4] : memref<2x32xf32, #tpu.memory_space<vmem>>, vector<2x32xf32>
      %c0_5 = arith.constant 0 : index
      %c0_6 = arith.constant 0 : index
      %c0_7 = arith.constant 0 : index
      %10 = vector.load %arg2[%c0_5, %c0_6, %c0_7] : memref<2x8x32xf32, #tpu.memory_space<vmem>>, vector<2x8x32xf32>
      %cst = arith.constant dense<0.000000e+00> : vector<2x32xf32>
      %11 = vector.multi_reduction <add>, %10, %cst [1] : vector<2x8x32xf32> to vector<2x32xf32>
      %12 = arith.addf %9, %11 : vector<2x32xf32>
      %c0_8 = arith.constant 0 : index
      %c0_9 = arith.constant 0 : index
      %13 = vector.load %arg6[%c0_8, %c0_9] : memref<2x32xf32, #tpu.memory_space<vmem>>, vector<2x32xf32>
      tpu.vector_store %arg6[%c0_8, %c0_9], %12 {strides = array<i32>} : memref<2x32xf32, #tpu.memory_space<vmem>>, vector<2x32xf32>,
    } else {
    }
    %c0_i32_2 = arith.constant 0 : i32
    %6 = arith.cmpi eq, %arg1, %c0_i32_2 : i32
    %7 = arith.extui %6 : i1 to i32
    %c0_i32_3 = arith.constant 0 : i32
    %8 = arith.cmpi ne, %7, %c0_i32_3 : i32
    scf.if %8 {
      %c0 = arith.constant 0 : index
      %c0_4 = arith.constant 0 : index
      %9 = vector.load %arg6[%c0, %c0_4] : memref<2x32xf32, #tpu.memory_space<vmem>>, vector<2x32xf32>
      %cst = arith.constant 1.250000e-01 : f32
      %10 = vector.broadcast %cst : f32 to vector<2x32xf32>
      %11 = arith.mulf %9, %10 : vector<2x32xf32>
      %c0_5 = arith.constant 0 : index
      %c0_6 = arith.constant 0 : index
      %12 = vector.load %arg3[%c0_5, %c0_6] : memref<32x32xf32, #tpu.memory_space<vmem>>, vector<32x32xf32>
      %cst_7 = arith.constant dense<0.000000e+00> : vector<2x32xf32>
      %13 = tpu.matmul %11, %12, %cst_7 {dimension_numbers = #tpu.dot_dimension_numbers<[1], [1], [0], [0], [0, 0, 1, 0], [], []>} : vector<2x32xf32>, vector<32x32xf32>, vector<2x32xf32> -> vector<2x32xf32>
      %c0_8 = arith.constant 0 : index
      %c0_9 = arith.constant 0 : index
      %14 = vector.load %arg4[%c0_8, %c0_9] : memref<1x32xf32, #tpu.memory_space<vmem>>, vector<1x32xf32>
      %15 = vector.broadcast %14 : vector<1x32xf32> to vector<2x32xf32>
      %16 = arith.addf %13, %15 : vector<2x32xf32>
      %17 = math.tanh %16 : vector<2x32xf32>
      %c0_10 = arith.constant 0 : index
      %c0_11 = arith.constant 0 : index
      %18 = vector.load %arg5[%c0_10, %c0_11] : memref<2x32xf32, #tpu.memory_space<vmem>>, vector<2x32xf32>
      tpu.vector_store %arg5[%c0_10, %c0_11], %17 {strides = array<i32>} : memref<2x32xf32, #tpu.memory_space<vmem>>, vector<2x32xf32>,
    } else {
    }
    return
  }
  func.func @transform_0(%arg0: i32, %arg1: i32) -> (i32, i32, i32) {
    %c0_i32 = arith.constant 0 : i32
    %c0_i32_0 = arith.constant 0 : i32
    return %arg0, %arg1, %c0_i32 : i32, i32, i32
  }
  func.func @transform_1(%arg0: i32, %arg1: i32) -> (i32, i32) {
    %c0_i32 = arith.constant 0 : i32
    %c0_i32_0 = arith.constant 0 : i32
    %c0_i32_1 = arith.constant 0 : i32
    return %c0_i32, %c0_i32_0 : i32, i32
  }
  func.func @transform_2(%arg0: i32, %arg1: i32) -> (i32, i32) {
    %c0_i32 = arith.constant 0 : i32
    %c0_i32_0 = arith.constant 0 : i32
    %c0_i32_1 = arith.constant 0 : i32
    return %c0_i32, %c0_i32_0 : i32, i32
  }
  func.func @transform_3(%arg0: i32, %arg1: i32) -> (i32, i32) {
    %c0_i32 = arith.constant 0 : i32
    %c0_i32_0 = arith.constant 0 : i32
    return %arg0, %c0_i32 : i32, i32
  }
}

</mosaic_0001>

<bundles_post_ra>
// kernel: tpu_custom_call.1
= control target key start
LH: loop header
LB: loop body
LE: loop exit
PB: predicated region body
PF: predicated region fallthrough
CT: control target
= control target key end

     0   :  { %8 = vsyncpa [#allocation4], 0  ;;  %s346_s0 = inlined_call_operand.hbm [shape: f32[2,8,32], index: 0, kind: input, shape index: {}]   ;;  %s347_s1 = inlined_call_operand.hbm [shape: f32[32,32], index: 1, kind: input, shape index: {}]   ;;  %s348_s2 = inlined_call_operand.vmem [shape: f32[1,32], index: 2, kind: input, shape index: {}]   ;;  %s349_s3 = inlined_call_operand.hbm [shape: f32[2,32], index: 3, kind: output, shape index: {}]  }
   0x1   :  { %9 = vsyncpa [#allocation7], 0 }
   0x2   :  { %10 = vsyncpa [#allocation5], 0  ;;  %s297_s12 = smov [#allocation3]  }
   0x3   :  { %s16_s13 = sshll.u32 %s297_s12, 4  ;;  %s17_s13 = int_to_ptr.vmem [resolvable:$true] %s16_s13 }
   0x4   :  { %s239_s14 = scalar_lea.vmem %s17_s13, 256  ;;  %p244_p1 = scmp.lt.s32.totalorder %s17_s13, %s17_s13 }
   0x5   :  { %p240_p0 = scmp.ne.s32.totalorder %s17_s13, %s239_s14  ;;  %p245_p2 = scmp.lt.s32.totalorder %s239_s14, %s239_s14 }
   0x7   :  { %p246_p3 = por %p245_p2, %p244_p1 }
   0x9   :  { %p247_p4 = pnand %p246_p3, %p240_p0 }
   0xb   :  { %250 = shalt.err (!%p247_p4)
}
   0xc   :  { %s298_s15 = smov 128   ;;  %s299_s16 = smov 8  }
   0xd   :  { %22 = dma.hbm_to_vmem [thread:$0]  %s346_s0, 256, %s17_s13, [#allocation4], %s298_s15, %s298_s15, %s299_s16  }
   0xe   :  { %s300_s19 = smov [#allocation6]  }
   0xf   :  { %s28_s20 = sshll.u32 %s300_s19, 4  ;;  %s29_s20 = int_to_ptr.vmem [resolvable:$true] %s28_s20 }
  0x10   :  { %s259_s21 = scalar_lea.vmem %s29_s20, 512  ;;  %p264_p6 = scmp.lt.s32.totalorder %s29_s20, %s29_s20 }
  0x11   :  { %p260_p5 = scmp.ne.s32.totalorder %s29_s20, %s259_s21  ;;  %p265_p7 = scmp.lt.s32.totalorder %s259_s21, %s259_s21 }
  0x13   :  { %p266_p8 = por %p265_p7, %p264_p6 }
  0x15   :  { %p267_p9 = pnand %p266_p8, %p260_p5 }
  0x17   :  { %270 = shalt.err (!%p267_p9)
}
  0x18   :  { %34 = dma.hbm_to_vmem [thread:$0]  %s347_s1, 512, %s29_s20, [#allocation7], %s298_s15, %s298_s15, %s299_s16  }
  0x19   :  { %291 = dma.done.wait [#allocation4], 256  }
  0x1a   :  { %292 = vsyncadd [#allocation4], 4294967040 }
  0x1b   :  { %293 = dma.done.wait [#allocation7], 512  }
  0x1c   :  { %294 = vsyncadd [#allocation7], 4294966784  ;;  %vm47_vm0 = vcmask 254976   ;;  %v301_v0 = vmov 0.0   ;;  %vm302_vm1 = vmmov 0   ;;  %vm56_vm2 = vcmask 261120  }
  0x1d   :  { %48 = vst.msk [vmem:[#allocation2] sm:$0x3] %vm47_vm0, %v301_v0  ;;  %211 = vmatprep.subr.mxu0 %v301_v0  ;;  %219 = vmatprep.mubr.msk.f32.mxu0 %vm302_vm1, %v301_v0  ;;  %v54_v1 = vld [vmem:[#allocation3] sm:$0xff]  ;;  %v55_v2 = vld [vmem:[#allocation3 + $0x8] sm:$0xff]  ;;  %v85_v13 = vld [vmem:[#allocation6 + $0x8] sm:$0xff]  ;;  %vm73_vm3 = vcmask 1041409  }
  0x1e   :  { %v87_v3 = vld [vmem:[#allocation6 + $0x18] sm:$0xff]  ;;  %v57_v4 = vsel %vm56_vm2, %v54_v1, 0.0  ;;  %v64_v5 = vsel %vm56_vm2, %v55_v2, 0.0  ;;  %v86_v8 = vld [vmem:[#allocation6 + $0x10] sm:$0xff]  ;;  %v84_v18 = vld [vmem:[#allocation6] sm:$0xff]  ;;  %s303_s24 = smov [#allocation8]  }
  0x1f   :  { %212 = vmatpush3.xpose.msk.msra.mxu0 %vm56_vm2, %v87_v3  ;;  %v58_v6 = vrot.slane %v57_v4, 4  ;;  %v65_v7 = vrot.slane %v64_v5, 4  ;;  %v200_v26 = vld [vmem:[%s348_s2] ss:$0 sm:$0xff]  ;;  %s190_s25 = sshll.u32 %s303_s24, 4  ;;  %s191_s25 = int_to_ptr.vmem [resolvable:$true] %s190_s25 }
  0x20   :  { %213 = vmatprep.subr.mxu0 %v301_v0  ;;  %s271_s26 = scalar_lea.vmem %s191_s25, 32  ;;  %p276_p11 = scmp.lt.s32.totalorder %s191_s25, %s191_s25 }
  0x21   :  { %v59_v9 = vadd.f32 %v58_v6, %v57_v4  ;;  %v66_v10 = vadd.f32 %v65_v7, %v64_v5  ;;  %p272_p10 = scmp.ne.s32.totalorder %s191_s25, %s271_s26  ;;  %p277_p12 = scmp.lt.s32.totalorder %s271_s26, %s271_s26 }
  0x23   :  { %214 = vmatpush3.xpose.msk.msra.mxu0 %vm56_vm2, %v86_v8  ;;  %v60_v11 = vrot.slane %v59_v9, 2  ;;  %v67_v12 = vrot.slane %v66_v10, 2  ;;  %p278_p13 = por %p277_p12, %p276_p11 }
  0x24   :  { %215 = vmatprep.subr.mxu0 %v301_v0  ;;  %v53_v19 = vld [vmem:[#allocation2] sm:$0x3] }
  0x25   :  { %v61_v14 = vadd.f32 %v60_v11, %v59_v9  ;;  %v68_v15 = vadd.f32 %v67_v12, %v66_v10  ;;  %p279_p0 = pnand %p278_p13, %p272_p10 }
  0x27   :  { %216 = vmatpush3.xpose.msk.msra.mxu0 %vm56_vm2, %v85_v13  ;;  %v62_v16 = vrot.slane %v61_v14, 1  ;;  %v69_v17 = vrot.slane %v68_v15, 1 }
  0x28   :  { %217 = vmatprep.subr.mxu0 %v301_v0 }
  0x29   :  { %v63_v20 = vadd.f32 %v62_v16, %v61_v14  ;;  %v70_v21 = vadd.f32 %v69_v17, %v68_v15 }
  0x2b   :  { %218 = vmatpush3.xpose.msk.msra.mxu0 %vm56_vm2, %v84_v18  ;;  %v74_v22 = vsel %vm73_vm3, %v70_v21, %v63_v20 }
  0x2c   :  { %v76_v23 = vadd.f32 %v74_v22, %v53_v19 }
  0x2e   :  { %78 = vst.msk [vmem:[#allocation2] sm:$0x3] %vm47_vm0, %v76_v23 }
  0x35   :  { %v82_v24 = vld [vmem:[#allocation2] sm:$0x3] }
  0x36   :  { %v83_v25 = vmul.f32 0.125, %v82_v24 }
  0x38   :  { %220 = vmatmul.mubr.msk.f32.vlgmr.msra.gmra.mxu0 %vm56_vm2, %v83_v25 }
  0xf8   :  { %v177_v27 = vpop.f32.mrf.mxu0 }
  0xf9   :  { %v178_v28 = vadd.f32 %v200_v26, %v177_v27 }
  0xfa   :  { %v221_v29 = vpop.f32.mrf.mxu0 }
  0xfb   :  { %229 = vtanh.f32 %v178_v28 }
 0x108   :  { %v230_v30 = vpop.eup %229 }
 0x109   :  { %183 = vst.msk [vmem:[#allocation8] sm:$0x3] %vm47_vm0, %v230_v30 }
 0x10a   :  { %282 = shalt.err (!%p279_p0)
}
 0x10b   :  { %193 = dma.vmem_to_hbm [thread:$0]  %s191_s25, 32, %s349_s3, [#allocation5]  }
 0x10c   :  { %295 = dma.done.wait [#allocation5], 32  }
 0x10d   :  { %296 = vsyncadd [#allocation5], 4294967264 }
 0x10e   :  { %197 = vsyncpa [#allocation4], 1 }
 0x10f   :  { %198 = vsyncpa [#allocation7], 1 }
 0x110   :  { %199 = vsyncpa [#allocation5], 1 }

// kernel: tpu_custom_call.1
= control target key start
LH: loop header
LB: loop body
LE: loop exit
PB: predicated region body
PF: predicated region fallthrough
CT: control target
= control target key end

     0   :  { %8 = vsyncpa [#allocation4], 0  ;;  %s346_s0 = inlined_call_operand.hbm [shape: f32[2,8,32], index: 0, kind: input, shape index: {}]   ;;  %s347_s1 = inlined_call_operand.hbm [shape: f32[32,32], index: 1, kind: input, shape index: {}]   ;;  %s348_s2 = inlined_call_operand.vmem [shape: f32[1,32], index: 2, kind: input, shape index: {}]   ;;  %s349_s3 = inlined_call_operand.hbm [shape: f32[2,32], index: 3, kind: output, shape index: {}]  }
   0x1   :  { %9 = vsyncpa [#allocation7], 0 }
   0x2   :  { %10 = vsyncpa [#allocation5], 0  ;;  %s297_s12 = smov [#allocation3]  }
   0x3   :  { %s16_s13 = sshll.u32 %s297_s12, 4  ;;  %s17_s13 = int_to_ptr.vmem [resolvable:$true] %s16_s13 }
   0x4   :  { %s239_s14 = scalar_lea.vmem %s17_s13, 256  ;;  %p244_p1 = scmp.lt.s32.totalorder %s17_s13, %s17_s13 }
   0x5   :  { %p240_p0 = scmp.ne.s32.totalorder %s17_s13, %s239_s14  ;;  %p245_p2 = scmp.lt.s32.totalorder %s239_s14, %s239_s14 }
   0x7   :  { %p246_p3 = por %p245_p2, %p244_p1 }
   0x9   :  { %p247_p4 = pnand %p246_p3, %p240_p0 }
   0xb   :  { %250 = shalt.err (!%p247_p4)
}
   0xc   :  { %s298_s15 = smov 128   ;;  %s299_s16 = smov 8  }
   0xd   :  { %22 = dma.hbm_to_vmem [thread:$0]  %s346_s0, 256, %s17_s13, [#allocation4], %s298_s15, %s298_s15, %s299_s16  }
   0xe   :  { %s300_s19 = smov [#allocation6]  }
   0xf   :  { %s28_s20 = sshll.u32 %s300_s19, 4  ;;  %s29_s20 = int_to_ptr.vmem [resolvable:$true] %s28_s20 }
  0x10   :  { %s259_s21 = scalar_lea.vmem %s29_s20, 512  ;;  %p264_p6 = scmp.lt.s32.totalorder %s29_s20, %s29_s20 }
  0x11   :  { %p260_p5 = scmp.ne.s32.totalorder %s29_s20, %s259_s21  ;;  %p265_p7 = scmp.lt.s32.totalorder %s259_s21, %s259_s21 }
  0x13   :  { %p266_p8 = por %p265_p7, %p264_p6 }
  0x15   :  { %p267_p9 = pnand %p266_p8, %p260_p5 }
  0x17   :  { %270 = shalt.err (!%p267_p9)
}
  0x18   :  { %34 = dma.hbm_to_vmem [thread:$0]  %s347_s1, 512, %s29_s20, [#allocation7], %s298_s15, %s298_s15, %s299_s16  }
  0x19   :  { %291 = dma.done.wait [#allocation4], 256  }
  0x1a   :  { %292 = vsyncadd [#allocation4], 4294967040 }
  0x1b   :  { %293 = dma.done.wait [#allocation7], 512  }
  0x1c   :  { %294 = vsyncadd [#allocation7], 4294966784  ;;  %vm47_vm0 = vcmask 254976   ;;  %v301_v0 = vmov 0.0   ;;  %vm302_vm1 = vmmov 0   ;;  %vm56_vm2 = vcmask 261120  }
  0x1d   :  { %48 = vst.msk [vmem:[#allocation2] sm:$0x3] %vm47_vm0, %v301_v0  ;;  %211 = vmatprep.subr.mxu0 %v301_v0  ;;  %219 = vmatprep.mubr.msk.f32.mxu0 %vm302_vm1, %v301_v0  ;;  %v54_v1 = vld [vmem:[#allocation3] sm:$0xff]  ;;  %v55_v2 = vld [vmem:[#allocation3 + $0x8] sm:$0xff]  ;;  %v85_v13 = vld [vmem:[#allocation6 + $0x8] sm:$0xff]  ;;  %vm73_vm3 = vcmask 1041409  }
  0x1e   :  { %v87_v3 = vld [vmem:[#allocation6 + $0x18] sm:$0xff]  ;;  %v57_v4 = vsel %vm56_vm2, %v54_v1, 0.0  ;;  %v64_v5 = vsel %vm56_vm2, %v55_v2, 0.0  ;;  %v86_v8 = vld [vmem:[#allocation6 + $0x10] sm:$0xff]  ;;  %v84_v18 = vld [vmem:[#allocation6] sm:$0xff]  ;;  %s303_s24 = smov [#allocation8]  }
  0x1f   :  { %212 = vmatpush3.xpose.msk.msra.mxu0 %vm56_vm2, %v87_v3  ;;  %v58_v6 = vrot.slane %v57_v4, 4  ;;  %v65_v7 = vrot.slane %v64_v5, 4  ;;  %v200_v26 = vld [vmem:[%s348_s2] ss:$0 sm:$0xff]  ;;  %s190_s25 = sshll.u32 %s303_s24, 4  ;;  %s191_s25 = int_to_ptr.vmem [resolvable:$true] %s190_s25 }
  0x20   :  { %213 = vmatprep.subr.mxu0 %v301_v0  ;;  %s271_s26 = scalar_lea.vmem %s191_s25, 32  ;;  %p276_p11 = scmp.lt.s32.totalorder %s191_s25, %s191_s25 }
  0x21   :  { %v59_v9 = vadd.f32 %v58_v6, %v57_v4  ;;  %v66_v10 = vadd.f32 %v65_v7, %v64_v5  ;;  %p272_p10 = scmp.ne.s32.totalorder %s191_s25, %s271_s26  ;;  %p277_p12 = scmp.lt.s32.totalorder %s271_s26, %s271_s26 }
  0x23   :  { %214 = vmatpush3.xpose.msk.msra.mxu0 %vm56_vm2, %v86_v8  ;;  %v60_v11 = vrot.slane %v59_v9, 2  ;;  %v67_v12 = vrot.slane %v66_v10, 2  ;;  %p278_p13 = por %p277_p12, %p276_p11 }
  0x24   :  { %215 = vmatprep.subr.mxu0 %v301_v0  ;;  %v53_v19 = vld [vmem:[#allocation2] sm:$0x3] }
  0x25   :  { %v61_v14 = vadd.f32 %v60_v11, %v59_v9  ;;  %v68_v15 = vadd.f32 %v67_v12, %v66_v10  ;;  %p279_p0 = pnand %p278_p13, %p272_p10 }
  0x27   :  { %216 = vmatpush3.xpose.msk.msra.mxu0 %vm56_vm2, %v85_v13  ;;  %v62_v16 = vrot.slane %v61_v14, 1  ;;  %v69_v17 = vrot.slane %v68_v15, 1 }
  0x28   :  { %217 = vmatprep.subr.mxu0 %v301_v0 }
  0x29   :  { %v63_v20 = vadd.f32 %v62_v16, %v61_v14  ;;  %v70_v21 = vadd.f32 %v69_v17, %v68_v15 }
  0x2b   :  { %218 = vmatpush3.xpose.msk.msra.mxu0 %vm56_vm2, %v84_v18  ;;  %v74_v22 = vsel %vm73_vm3, %v70_v21, %v63_v20 }
  0x2c   :  { %v76_v23 = vadd.f32 %v74_v22, %v53_v19 }
  0x2e   :  { %78 = vst.msk [vmem:[#allocation2] sm:$0x3] %vm47_vm0, %v76_v23 }
  0x35   :  { %v82_v24 = vld [vmem:[#allocation2] sm:$0x3] }
  0x36   :  { %v83_v25 = vmul.f32 0.125, %v82_v24 }
  0x38   :  { %220 = vmatmul.mubr.msk.f32.vlgmr.msra.gmra.mxu0 %vm56_vm2, %v83_v25 }
  0xf8   :  { %v177_v27 = vpop.f32.mrf.mxu0 }
  0xf9   :  { %v178_v28 = vadd.f32 %v200_v26, %v177_v27 }
  0xfa   :  { %v221_v29 = vpop.f32.mrf.mxu0 }
  0xfb   :  { %229 = vtanh.f32 %v178_v28 }
 0x108   :  { %v230_v30 = vpop.eup %229 }
 0x109   :  { %183 = vst.msk [vmem:[#allocation8] sm:$0x3] %vm47_vm0, %v230_v30 }
 0x10a   :  { %282 = shalt.err (!%p279_p0)
}
 0x10b   :  { %193 = dma.vmem_to_hbm [thread:$0]  %s191_s25, 32, %s349_s3, [#allocation5]  }
 0x10c   :  { %295 = dma.done.wait [#allocation5], 32  }
 0x10d   :  { %296 = vsyncadd [#allocation5], 4294967264 }
 0x10e   :  { %197 = vsyncpa [#allocation4], 1 }
 0x10f   :  { %198 = vsyncpa [#allocation7], 1 }
 0x110   :  { %199 = vsyncpa [#allocation5], 1 }

</bundles_post_ra>
